<compile_context>
chip_gen: v7x
topology: tpu7x:2x2x1
jax: 0.10.0
libtpu: 0.0.40
codegen_flags: <defaults>
</compile_context>

<pallas_src>
import functools

import jax
import jax.numpy as jnp
from jax.experimental import pallas as pl
from jax.experimental.pallas import tpu as pltpu


# ----------------------------------------------------------------------------
# Fused-gate GRU cell.
#   gx    : (B, 3H)  = x_t @ W_ih^T + (b_ih + [b_hr, b_hz, 0])   (precomputed)
#   h_prev: (B, H)
#   whh   : (H, 3H)  (transposed, gates [r|z|n] along lanes)
#   b_hn  : (1, H)
# ----------------------------------------------------------------------------
def _gru_cell(gx, h_prev, whh, b_hn, H):
    gh = jnp.dot(h_prev, whh, preferred_element_type=jnp.float32)      # (B, 3H)
    r = jax.nn.sigmoid(gx[:, 0:H] + gh[:, 0:H])
    z = jax.nn.sigmoid(gx[:, H:2 * H] + gh[:, H:2 * H])
    n = jnp.tanh(gx[:, 2 * H:3 * H] + r * (gh[:, 2 * H:3 * H] + b_hn))
    return (1.0 - z) * n + z * h_prev


# ----------------------------------------------------------------------------
# One fused kernel: BatchNorm2d(1) -> hoisted input projections -> forward GRU
# recurrence (unrolled) -> single backward cell step -> sentence embedding ->
# fc + log_softmax.  Single invocation, no grid.
# ----------------------------------------------------------------------------
def bigru_fused_kernel(
    emb_ref,                                   # (T*B, E)
    wih_f_ref, whh_f_ref, bx_f_ref, bhn_f_ref, # (E,3H) (H,3H) (1,3H) (1,H)
    wih_b_ref, whh_b_ref, bx_b_ref, bhn_b_ref,
    dr_ref,                                    # (B, 2)  float [d, r]
    fcw_ref, fcb_ref,                          # (2H+2, 2), (1, 2)
    y_ref,                                     # out: (B, 2) log-softmax
    se_ref,                                    # out: (B, 2H+2) sentence embedding
    *, seq_len, hidden_dim,
):
    T = seq_len
    H = hidden_dim
    TB, _ = emb_ref.shape
    B = TB // T

    # ---- BatchNorm2d(1): batch statistics over the entire single-channel slab.
    x = emb_ref[...]
    mean = jnp.mean(x)
    diff = x - mean
    var = jnp.mean(diff * diff)                       # biased variance (PyTorch BN fwd)
    xn = diff * jax.lax.rsqrt(var + 1e-5)             # affine w=1, b=0 at init

    # ---- Hoisted input projections (fused gates, one big matmul).
    gx_f = jnp.dot(xn, wih_f_ref[...],
                   preferred_element_type=jnp.float32) + bx_f_ref[...]     # (T*B, 3H)
    # Backward direction: only timestep T-1 is ever consumed (rnn[-1] backward half),
    # so only that row-block of the input projection is needed.
    gx_b = jnp.dot(xn[(T - 1) * B:T * B, :], wih_b_ref[...],
                   preferred_element_type=jnp.float32) + bx_b_ref[...]     # (B, 3H)

    # ---- Forward recurrence: h0 = 0, unrolled over the (small, static) T.
    whh_f = whh_f_ref[...]
    bhn_f = bhn_f_ref[...]
    h_f = jnp.zeros((B, H), jnp.float32)
    for t in range(T):
        h_f = _gru_cell(gx_f[t * B:(t + 1) * B, :], h_f, whh_f, bhn_f, H)

    # ---- Backward direction: rnn[-1]'s backward half is the hidden state after
    # processing ONLY x[T-1] starting from h0 = 0 -> exactly one cell step.
    h_b = _gru_cell(gx_b, jnp.zeros((B, H), jnp.float32),
                    whh_b_ref[...], bhn_b_ref[...], H)

    # ---- sentence_embedding = [h_fwd | h_bwd | d | r]
    se_ref[:, 0:H] = h_f
    se_ref[:, H:2 * H] = h_b
    se_ref[:, 2 * H:2 * H + 2] = dr_ref[...]

    # ---- Dropout == identity; fc + numerically-stable log_softmax.
    se = se_ref[...]
    logits = jnp.dot(se, fcw_ref[...],
                     preferred_element_type=jnp.float32) + fcb_ref[...]    # (B, 2)
    m = jnp.max(logits, axis=1, keepdims=True)
    shifted = logits - m
    y_ref[...] = shifted - jnp.log(jnp.sum(jnp.exp(shifted), axis=1, keepdims=True))


# ----------------------------------------------------------------------------
# Offline (wrapper-side) weight preparation: transpose to (in, 3H) and
# pre-combine biases (r/z gates get b_ih + b_hh; n gate keeps b_hn separate).
# ----------------------------------------------------------------------------
def prepare_gru_params(weight_ih, weight_hh, bias_ih, bias_hh, hidden_dim):
    H = hidden_dim
    wih_t = jnp.transpose(weight_ih)                                  # (E, 3H)
    whh_t = jnp.transpose(weight_hh)                                  # (H, 3H)
    b_x = jnp.concatenate(
        [bias_ih[:2 * H] + bias_hh[:2 * H], bias_ih[2 * H:]]).reshape(1, 3 * H)
    b_hn = bias_hh[2 * H:].reshape(1, H)
    return wih_t, whh_t, b_x, b_hn


# ----------------------------------------------------------------------------
# Full forward pass.
# ----------------------------------------------------------------------------
def bigru_forward(params, x_tokens, follows_d, follows_r, hidden_dim):
    T, B = x_tokens.shape
    H = hidden_dim

    # Embedding lookup (gather) stays in plain JAX glue; result is (T*B, E) so the
    # kernel works on a 2-D slab (no in-kernel reshape needed).
    emb2d = jnp.take(params["embedding"], x_tokens.reshape(-1), axis=0)

    wih_f, whh_f, bx_f, bhn_f = prepare_gru_params(
        params["weight_ih_f"], params["weight_hh_f"],
        params["bias_ih_f"], params["bias_hh_f"], H)
    wih_b, whh_b, bx_b, bhn_b = prepare_gru_params(
        params["weight_ih_b"], params["weight_hh_b"],
        params["bias_ih_b"], params["bias_hh_b"], H)

    dr = jnp.stack([follows_d.astype(jnp.float32),
                    follows_r.astype(jnp.float32)], axis=1)           # (B, 2)

    fcw = jnp.transpose(params["fc_w"])                               # (2H+2, 2)
    fcb = params["fc_b"].reshape(1, 2)

    kernel = functools.partial(bigru_fused_kernel, seq_len=T, hidden_dim=H)
    log_softmax_y, sentence_embedding = pl.pallas_call(
        kernel,
        out_shape=(
            jax.ShapeDtypeStruct((B, 2), jnp.float32),
            jax.ShapeDtypeStruct((B, 2 * H + 2), jnp.float32),
        ),
        compiler_params=pltpu.CompilerParams(vmem_limit_bytes=32 * 1024 * 1024),
    )(emb2d,
      wih_f, whh_f, bx_f, bhn_f,
      wih_b, whh_b, bx_b, bhn_b,
      dr, fcw, fcb)
    return log_softmax_y, sentence_embedding


# ----------------------------------------------------------------------------
# Pure-JAX reference (mirrors torch.nn.GRU math) for a correctness check.
# ----------------------------------------------------------------------------
def bigru_reference(params, x_tokens, follows_d, follows_r, hidden_dim):
    H = hidden_dim
    T, B = x_tokens.shape
    emb = jnp.take(params["embedding"], x_tokens, axis=0)             # (T, B, E)
    mean = jnp.mean(emb)
    var = jnp.mean((emb - mean) ** 2)
    xn = (emb - mean) / jnp.sqrt(var + 1e-5)

    def gru_dir(x_seq, wih, whh, bih, bhh):
        def cell(h, x_t):
            gx = x_t @ wih.T + bih
            gh = h @ whh.T + bhh
            r = jax.nn.sigmoid(gx[:, :H] + gh[:, :H])
            z = jax.nn.sigmoid(gx[:, H:2 * H] + gh[:, H:2 * H])
            n = jnp.tanh(gx[:, 2 * H:] + r * gh[:, 2 * H:])
            h_new = (1.0 - z) * n + z * h
            return h_new, h_new
        h0 = jnp.zeros((B, H), jnp.float32)
        _, out = jax.lax.scan(cell, h0, x_seq)
        return out                                                    # (T, B, H)

    out_f = gru_dir(xn, params["weight_ih_f"], params["weight_hh_f"],
                    params["bias_ih_f"], params["bias_hh_f"])
    out_b = gru_dir(xn[::-1], params["weight_ih_b"], params["weight_hh_b"],
                    params["bias_ih_b"], params["bias_hh_b"])[::-1]
    rnn_last = jnp.concatenate([out_f[-1], out_b[-1]], axis=1)
    d = follows_d.astype(jnp.float32)[:, None]
    r = follows_r.astype(jnp.float32)[:, None]
    se = jnp.concatenate([rnn_last, d, r], axis=1)
    logits = se @ params["fc_w"].T + params["fc_b"]
    return jax.nn.log_softmax(logits, axis=1), se


# ----------------------------------------------------------------------------
# Deterministic synthetic parameters (PyTorch-shaped: W_ih (3H,E), W_hh (3H,H), ...).
# ----------------------------------------------------------------------------
def init_params(key, vocab_size, embedding_dim, hidden_dim):
    E, H = embedding_dim, hidden_dim
    ks = jax.random.split(key, 12)
    s = 0.1
    return {
        "embedding":   s * jax.random.normal(ks[0], (vocab_size, E), jnp.float32),
        "weight_ih_f": s * jax.random.normal(ks[1], (3 * H, E), jnp.float32),
        "weight_hh_f": s * jax.random.normal(ks[2], (3 * H, H), jnp.float32),
        "bias_ih_f":   s * jax.random.normal(ks[3], (3 * H,), jnp.float32),
        "bias_hh_f":   s * jax.random.normal(ks[4], (3 * H,), jnp.float32),
        "weight_ih_b": s * jax.random.normal(ks[5], (3 * H, E), jnp.float32),
        "weight_hh_b": s * jax.random.normal(ks[6], (3 * H, H), jnp.float32),
        "bias_ih_b":   s * jax.random.normal(ks[7], (3 * H,), jnp.float32),
        "bias_hh_b":   s * jax.random.normal(ks[8], (3 * H,), jnp.float32),
        "fc_w":        s * jax.random.normal(ks[9], (2, 2 * H + 2), jnp.float32),
        "fc_b":        s * jax.random.normal(ks[10], (2,), jnp.float32),
    }


if __name__ == "__main__":
    vocab_size = 50
    embedding_dim = 16
    hidden_dim = 32
    batch_size = 4
    seq_len = 8

    key = jax.random.PRNGKey(0)
    k_par, k_tok, k_d, k_r = jax.random.split(key, 4)

    params = init_params(k_par, vocab_size, embedding_dim, hidden_dim)

    x_tokens = jax.random.randint(k_tok, (seq_len, batch_size), 0, vocab_size, jnp.int32)
    follows_d = jax.random.randint(k_d, (batch_size,), 0, 10, jnp.int32)
    follows_r = jax.random.randint(k_r, (batch_size,), 0, 10, jnp.int32)

    fwd = jax.jit(functools.partial(bigru_forward, hidden_dim=hidden_dim))
    log_softmax_y, sentence_embedding = fwd(params, x_tokens, follows_d, follows_r)
    jax.block_until_ready((log_softmax_y, sentence_embedding))

    assert log_softmax_y.shape == (batch_size, 2)
    assert sentence_embedding.shape == (batch_size, 2 * hidden_dim + 2)

    # Correctness check against the pure-JAX reference (loose tolerance to allow for
    # MXU f32 accumulation differences).
    y_ref, se_ref_val = bigru_reference(params, x_tokens, follows_d, follows_r, hidden_dim)
    assert bool(jnp.allclose(log_softmax_y, y_ref, atol=1e-2, rtol=1e-2))
    assert bool(jnp.allclose(sentence_embedding, se_ref_val, atol=1e-2, rtol=1e-2))

    print("KERNEL_OK")
</pallas_src>

<mosaic_0001>
module attributes {stable_mosaic.version = 11 : i64} {
  func.func @bigru_fused_kernel(%arg0: memref<32x16xf32, #tpu.memory_space<vmem>>, %arg1: memref<16x96xf32, #tpu.memory_space<vmem>>, %arg2: memref<32x96xf32, #tpu.memory_space<vmem>>, %arg3: memref<1x96xf32, #tpu.memory_space<vmem>>, %arg4: memref<1x32xf32, #tpu.memory_space<vmem>>, %arg5: memref<16x96xf32, #tpu.memory_space<vmem>>, %arg6: memref<32x96xf32, #tpu.memory_space<vmem>>, %arg7: memref<1x96xf32, #tpu.memory_space<vmem>>, %arg8: memref<1x32xf32, #tpu.memory_space<vmem>>, %arg9: memref<4x2xf32, #tpu.memory_space<vmem>>, %arg10: memref<66x2xf32, #tpu.memory_space<vmem>>, %arg11: memref<1x2xf32, #tpu.memory_space<vmem>>, %arg12: memref<4x2xf32, #tpu.memory_space<vmem>>, %arg13: memref<4x66xf32, #tpu.memory_space<vmem>>) attributes {dimension_semantics = [], scalar_prefetch = 0 : i64, scratch_operands = 0 : i64, tpu.core_type = #tpu.core_type<tc>} {
    %c0 = arith.constant 0 : index
    %c0_0 = arith.constant 0 : index
    %0 = vector.load %arg0[%c0, %c0_0] : memref<32x16xf32, #tpu.memory_space<vmem>>, vector<32x16xf32>
    %1 = vector.shape_cast %0 : vector<32x16xf32> to vector<1x32x16xf32>
    %cst = arith.constant dense<0.000000e+00> : vector<1xf32>
    %2 = vector.multi_reduction <add>, %1, %cst [1, 2] : vector<1x32x16xf32> to vector<1xf32>
    %3 = vector.shape_cast %2 : vector<1xf32> to vector<1x1x1xf32>
    %4 = vector.extract %3[0, 0, 0] : f32 from vector<1x1x1xf32>
    %cst_1 = arith.constant 5.120000e+02 : f32
    %5 = arith.divf %4, %cst_1 : f32
    %6 = vector.broadcast %5 : f32 to vector<32x16xf32>
    %7 = arith.subf %0, %6 : vector<32x16xf32>
    %8 = arith.mulf %7, %7 : vector<32x16xf32>
    %9 = vector.shape_cast %8 : vector<32x16xf32> to vector<1x32x16xf32>
    %cst_2 = arith.constant dense<0.000000e+00> : vector<1xf32>
    %10 = vector.multi_reduction <add>, %9, %cst_2 [1, 2] : vector<1x32x16xf32> to vector<1xf32>
    %11 = vector.shape_cast %10 : vector<1xf32> to vector<1x1x1xf32>
    %12 = vector.extract %11[0, 0, 0] : f32 from vector<1x1x1xf32>
    %cst_3 = arith.constant 5.120000e+02 : f32
    %13 = arith.divf %12, %cst_3 : f32
    %cst_4 = arith.constant 9.99999974E-6 : f32
    %14 = arith.addf %13, %cst_4 : f32
    %15 = math.rsqrt %14 : f32
    %16 = vector.broadcast %15 : f32 to vector<32x16xf32>
    %17 = arith.mulf %7, %16 : vector<32x16xf32>
    %c0_5 = arith.constant 0 : index
    %c0_6 = arith.constant 0 : index
    %18 = vector.load %arg1[%c0_5, %c0_6] : memref<16x96xf32, #tpu.memory_space<vmem>>, vector<16x96xf32>
    %cst_7 = arith.constant dense<0.000000e+00> : vector<32x96xf32>
    %19 = tpu.matmul %17, %18, %cst_7 {dimension_numbers = #tpu.dot_dimension_numbers<[1], [0], [0], [1], [0, 0, 1, 1], [], []>} : vector<32x16xf32>, vector<16x96xf32>, vector<32x96xf32> -> vector<32x96xf32>
    %c0_8 = arith.constant 0 : index
    %c0_9 = arith.constant 0 : index
    %20 = vector.load %arg3[%c0_8, %c0_9] : memref<1x96xf32, #tpu.memory_space<vmem>>, vector<1x96xf32>
    %21 = vector.broadcast %20 : vector<1x96xf32> to vector<32x96xf32>
    %22 = arith.addf %19, %21 : vector<32x96xf32>
    %23 = vector.extract_strided_slice %17 {offsets = [28, 0], sizes = [4, 16], strides = [1, 1]} : vector<32x16xf32> to vector<4x16xf32>
    %c0_10 = arith.constant 0 : index
    %c0_11 = arith.constant 0 : index
    %24 = vector.load %arg5[%c0_10, %c0_11] : memref<16x96xf32, #tpu.memory_space<vmem>>, vector<16x96xf32>
    %cst_12 = arith.constant dense<0.000000e+00> : vector<4x96xf32>
    %25 = tpu.matmul %23, %24, %cst_12 {dimension_numbers = #tpu.dot_dimension_numbers<[1], [0], [0], [1], [0, 0, 1, 1], [], []>} : vector<4x16xf32>, vector<16x96xf32>, vector<4x96xf32> -> vector<4x96xf32>
    %c0_13 = arith.constant 0 : index
    %c0_14 = arith.constant 0 : index
    %26 = vector.load %arg7[%c0_13, %c0_14] : memref<1x96xf32, #tpu.memory_space<vmem>>, vector<1x96xf32>
    %27 = vector.broadcast %26 : vector<1x96xf32> to vector<4x96xf32>
    %28 = arith.addf %25, %27 : vector<4x96xf32>
    %c0_15 = arith.constant 0 : index
    %c0_16 = arith.constant 0 : index
    %29 = vector.load %arg2[%c0_15, %c0_16] : memref<32x96xf32, #tpu.memory_space<vmem>>, vector<32x96xf32>
    %c0_17 = arith.constant 0 : index
    %c0_18 = arith.constant 0 : index
    %30 = vector.load %arg4[%c0_17, %c0_18] : memref<1x32xf32, #tpu.memory_space<vmem>>, vector<1x32xf32>
    %cst_19 = arith.constant 0.000000e+00 : f32
    %31 = vector.broadcast %cst_19 : f32 to vector<4x32xf32>
    %32 = vector.extract_strided_slice %22 {offsets = [0, 0], sizes = [4, 96], strides = [1, 1]} : vector<32x96xf32> to vector<4x96xf32>
    %cst_20 = arith.constant dense<0.000000e+00> : vector<4x96xf32>
    %33 = tpu.matmul %31, %29, %cst_20 {dimension_numbers = #tpu.dot_dimension_numbers<[1], [0], [0], [1], [0, 0, 1, 1], [], []>} : vector<4x32xf32>, vector<32x96xf32>, vector<4x96xf32> -> vector<4x96xf32>
    %34 = vector.extract_strided_slice %32 {offsets = [0, 0], sizes = [4, 32], strides = [1, 1]} : vector<4x96xf32> to vector<4x32xf32>
    %35 = vector.extract_strided_slice %33 {offsets = [0, 0], sizes = [4, 32], strides = [1, 1]} : vector<4x96xf32> to vector<4x32xf32>
    %36 = arith.addf %34, %35 : vector<4x32xf32>
    %37 = arith.negf %36 : vector<4x32xf32>
    %38 = math.exp %37 : vector<4x32xf32>
    %cst_21 = arith.constant 1.000000e+00 : f32
    %39 = vector.broadcast %cst_21 : f32 to vector<4x32xf32>
    %40 = arith.addf %39, %38 : vector<4x32xf32>
    %41 = arith.divf %39, %40 : vector<4x32xf32>
    %42 = vector.extract_strided_slice %32 {offsets = [0, 32], sizes = [4, 32], strides = [1, 1]} : vector<4x96xf32> to vector<4x32xf32>
    %43 = vector.extract_strided_slice %33 {offsets = [0, 32], sizes = [4, 32], strides = [1, 1]} : vector<4x96xf32> to vector<4x32xf32>
    %44 = arith.addf %42, %43 : vector<4x32xf32>
    %45 = arith.negf %44 : vector<4x32xf32>
    %46 = math.exp %45 : vector<4x32xf32>
    %cst_22 = arith.constant 1.000000e+00 : f32
    %47 = vector.broadcast %cst_22 : f32 to vector<4x32xf32>
    %48 = arith.addf %47, %46 : vector<4x32xf32>
    %49 = arith.divf %47, %48 : vector<4x32xf32>
    %50 = vector.extract_strided_slice %32 {offsets = [0, 64], sizes = [4, 32], strides = [1, 1]} : vector<4x96xf32> to vector<4x32xf32>
    %51 = vector.extract_strided_slice %33 {offsets = [0, 64], sizes = [4, 32], strides = [1, 1]} : vector<4x96xf32> to vector<4x32xf32>
    %52 = vector.broadcast %30 : vector<1x32xf32> to vector<4x32xf32>
    %53 = arith.addf %51, %52 : vector<4x32xf32>
    %54 = arith.mulf %41, %53 : vector<4x32xf32>
    %55 = arith.addf %50, %54 : vector<4x32xf32>
    %56 = math.tanh %55 : vector<4x32xf32>
    %cst_23 = arith.constant 1.000000e+00 : f32
    %57 = vector.broadcast %cst_23 : f32 to vector<4x32xf32>
    %58 = arith.subf %57, %49 : vector<4x32xf32>
    %59 = arith.mulf %58, %56 : vector<4x32xf32>
    %60 = arith.mulf %49, %31 : vector<4x32xf32>
    %61 = arith.addf %59, %60 : vector<4x32xf32>
    %62 = vector.extract_strided_slice %22 {offsets = [4, 0], sizes = [4, 96], strides = [1, 1]} : vector<32x96xf32> to vector<4x96xf32>
    %cst_24 = arith.constant dense<0.000000e+00> : vector<4x96xf32>
    %63 = tpu.matmul %61, %29, %cst_24 {dimension_numbers = #tpu.dot_dimension_numbers<[1], [0], [0], [1], [0, 0, 1, 1], [], []>} : vector<4x32xf32>, vector<32x96xf32>, vector<4x96xf32> -> vector<4x96xf32>
    %64 = vector.extract_strided_slice %62 {offsets = [0, 0], sizes = [4, 32], strides = [1, 1]} : vector<4x96xf32> to vector<4x32xf32>
    %65 = vector.extract_strided_slice %63 {offsets = [0, 0], sizes = [4, 32], strides = [1, 1]} : vector<4x96xf32> to vector<4x32xf32>
    %66 = arith.addf %64, %65 : vector<4x32xf32>
    %67 = arith.negf %66 : vector<4x32xf32>
    %68 = math.exp %67 : vector<4x32xf32>
    %cst_25 = arith.constant 1.000000e+00 : f32
    %69 = vector.broadcast %cst_25 : f32 to vector<4x32xf32>
    %70 = arith.addf %69, %68 : vector<4x32xf32>
    %71 = arith.divf %69, %70 : vector<4x32xf32>
    %72 = vector.extract_strided_slice %62 {offsets = [0, 32], sizes = [4, 32], strides = [1, 1]} : vector<4x96xf32> to vector<4x32xf32>
    %73 = vector.extract_strided_slice %63 {offsets = [0, 32], sizes = [4, 32], strides = [1, 1]} : vector<4x96xf32> to vector<4x32xf32>
    %74 = arith.addf %72, %73 : vector<4x32xf32>
    %75 = arith.negf %74 : vector<4x32xf32>
    %76 = math.exp %75 : vector<4x32xf32>
    %cst_26 = arith.constant 1.000000e+00 : f32
    %77 = vector.broadcast %cst_26 : f32 to vector<4x32xf32>
    %78 = arith.addf %77, %76 : vector<4x32xf32>
    %79 = arith.divf %77, %78 : vector<4x32xf32>
    %80 = vector.extract_strided_slice %62 {offsets = [0, 64], sizes = [4, 32], strides = [1, 1]} : vector<4x96xf32> to vector<4x32xf32>
    %81 = vector.extract_strided_slice %63 {offsets = [0, 64], sizes = [4, 32], strides = [1, 1]} : vector<4x96xf32> to vector<4x32xf32>
    %82 = vector.broadcast %30 : vector<1x32xf32> to vector<4x32xf32>
    %83 = arith.addf %81, %82 : vector<4x32xf32>
    %84 = arith.mulf %71, %83 : vector<4x32xf32>
    %85 = arith.addf %80, %84 : vector<4x32xf32>
    %86 = math.tanh %85 : vector<4x32xf32>
    %cst_27 = arith.constant 1.000000e+00 : f32
    %87 = vector.broadcast %cst_27 : f32 to vector<4x32xf32>
    %88 = arith.subf %87, %79 : vector<4x32xf32>
    %89 = arith.mulf %88, %86 : vector<4x32xf32>
    %90 = arith.mulf %79, %61 : vector<4x32xf32>
    %91 = arith.addf %89, %90 : vector<4x32xf32>
    %92 = vector.extract_strided_slice %22 {offsets = [8, 0], sizes = [4, 96], strides = [1, 1]} : vector<32x96xf32> to vector<4x96xf32>
    %cst_28 = arith.constant dense<0.000000e+00> : vector<4x96xf32>
    %93 = tpu.matmul %91, %29, %cst_28 {dimension_numbers = #tpu.dot_dimension_numbers<[1], [0], [0], [1], [0, 0, 1, 1], [], []>} : vector<4x32xf32>, vector<32x96xf32>, vector<4x96xf32> -> vector<4x96xf32>
    %94 = vector.extract_strided_slice %92 {offsets = [0, 0], sizes = [4, 32], strides = [1, 1]} : vector<4x96xf32> to vector<4x32xf32>
    %95 = vector.extract_strided_slice %93 {offsets = [0, 0], sizes = [4, 32], strides = [1, 1]} : vector<4x96xf32> to vector<4x32xf32>
    %96 = arith.addf %94, %95 : vector<4x32xf32>
    %97 = arith.negf %96 : vector<4x32xf32>
    %98 = math.exp %97 : vector<4x32xf32>
    %cst_29 = arith.constant 1.000000e+00 : f32
    %99 = vector.broadcast %cst_29 : f32 to vector<4x32xf32>
    %100 = arith.addf %99, %98 : vector<4x32xf32>
    %101 = arith.divf %99, %100 : vector<4x32xf32>
    %102 = vector.extract_strided_slice %92 {offsets = [0, 32], sizes = [4, 32], strides = [1, 1]} : vector<4x96xf32> to vector<4x32xf32>
    %103 = vector.extract_strided_slice %93 {offsets = [0, 32], sizes = [4, 32], strides = [1, 1]} : vector<4x96xf32> to vector<4x32xf32>
    %104 = arith.addf %102, %103 : vector<4x32xf32>
    %105 = arith.negf %104 : vector<4x32xf32>
    %106 = math.exp %105 : vector<4x32xf32>
    %cst_30 = arith.constant 1.000000e+00 : f32
    %107 = vector.broadcast %cst_30 : f32 to vector<4x32xf32>
    %108 = arith.addf %107, %106 : vector<4x32xf32>
    %109 = arith.divf %107, %108 : vector<4x32xf32>
    %110 = vector.extract_strided_slice %92 {offsets = [0, 64], sizes = [4, 32], strides = [1, 1]} : vector<4x96xf32> to vector<4x32xf32>
    %111 = vector.extract_strided_slice %93 {offsets = [0, 64], sizes = [4, 32], strides = [1, 1]} : vector<4x96xf32> to vector<4x32xf32>
    %112 = vector.broadcast %30 : vector<1x32xf32> to vector<4x32xf32>
    %113 = arith.addf %111, %112 : vector<4x32xf32>
    %114 = arith.mulf %101, %113 : vector<4x32xf32>
    %115 = arith.addf %110, %114 : vector<4x32xf32>
    %116 = math.tanh %115 : vector<4x32xf32>
    %cst_31 = arith.constant 1.000000e+00 : f32
    %117 = vector.broadcast %cst_31 : f32 to vector<4x32xf32>
    %118 = arith.subf %117, %109 : vector<4x32xf32>
    %119 = arith.mulf %118, %116 : vector<4x32xf32>
    %120 = arith.mulf %109, %91 : vector<4x32xf32>
    %121 = arith.addf %119, %120 : vector<4x32xf32>
    %122 = vector.extract_strided_slice %22 {offsets = [12, 0], sizes = [4, 96], strides = [1, 1]} : vector<32x96xf32> to vector<4x96xf32>
    %cst_32 = arith.constant dense<0.000000e+00> : vector<4x96xf32>
    %123 = tpu.matmul %121, %29, %cst_32 {dimension_numbers = #tpu.dot_dimension_numbers<[1], [0], [0], [1], [0, 0, 1, 1], [], []>} : vector<4x32xf32>, vector<32x96xf32>, vector<4x96xf32> -> vector<4x96xf32>
    %124 = vector.extract_strided_slice %122 {offsets = [0, 0], sizes = [4, 32], strides = [1, 1]} : vector<4x96xf32> to vector<4x32xf32>
    %125 = vector.extract_strided_slice %123 {offsets = [0, 0], sizes = [4, 32], strides = [1, 1]} : vector<4x96xf32> to vector<4x32xf32>
    %126 = arith.addf %124, %125 : vector<4x32xf32>
    %127 = arith.negf %126 : vector<4x32xf32>
    %128 = math.exp %127 : vector<4x32xf32>
    %cst_33 = arith.constant 1.000000e+00 : f32
    %129 = vector.broadcast %cst_33 : f32 to vector<4x32xf32>
    %130 = arith.addf %129, %128 : vector<4x32xf32>
    %131 = arith.divf %129, %130 : vector<4x32xf32>
    %132 = vector.extract_strided_slice %122 {offsets = [0, 32], sizes = [4, 32], strides = [1, 1]} : vector<4x96xf32> to vector<4x32xf32>
    %133 = vector.extract_strided_slice %123 {offsets = [0, 32], sizes = [4, 32], strides = [1, 1]} : vector<4x96xf32> to vector<4x32xf32>
    %134 = arith.addf %132, %133 : vector<4x32xf32>
    %135 = arith.negf %134 : vector<4x32xf32>
    %136 = math.exp %135 : vector<4x32xf32>
    %cst_34 = arith.constant 1.000000e+00 : f32
    %137 = vector.broadcast %cst_34 : f32 to vector<4x32xf32>
    %138 = arith.addf %137, %136 : vector<4x32xf32>
    %139 = arith.divf %137, %138 : vector<4x32xf32>
    %140 = vector.extract_strided_slice %122 {offsets = [0, 64], sizes = [4, 32], strides = [1, 1]} : vector<4x96xf32> to vector<4x32xf32>
    %141 = vector.extract_strided_slice %123 {offsets = [0, 64], sizes = [4, 32], strides = [1, 1]} : vector<4x96xf32> to vector<4x32xf32>
    %142 = vector.broadcast %30 : vector<1x32xf32> to vector<4x32xf32>
    %143 = arith.addf %141, %142 : vector<4x32xf32>
    %144 = arith.mulf %131, %143 : vector<4x32xf32>
    %145 = arith.addf %140, %144 : vector<4x32xf32>
    %146 = math.tanh %145 : vector<4x32xf32>
    %cst_35 = arith.constant 1.000000e+00 : f32
    %147 = vector.broadcast %cst_35 : f32 to vector<4x32xf32>
    %148 = arith.subf %147, %139 : vector<4x32xf32>
    %149 = arith.mulf %148, %146 : vector<4x32xf32>
    %150 = arith.mulf %139, %121 : vector<4x32xf32>
    %151 = arith.addf %149, %150 : vector<4x32xf32>
    %152 = vector.extract_strided_slice %22 {offsets = [16, 0], sizes = [4, 96], strides = [1, 1]} : vector<32x96xf32> to vector<4x96xf32>
    %cst_36 = arith.constant dense<0.000000e+00> : vector<4x96xf32>
    %153 = tpu.matmul %151, %29, %cst_36 {dimension_numbers = #tpu.dot_dimension_numbers<[1], [0], [0], [1], [0, 0, 1, 1], [], []>} : vector<4x32xf32>, vector<32x96xf32>, vector<4x96xf32> -> vector<4x96xf32>
    %154 = vector.extract_strided_slice %152 {offsets = [0, 0], sizes = [4, 32], strides = [1, 1]} : vector<4x96xf32> to vector<4x32xf32>
    %155 = vector.extract_strided_slice %153 {offsets = [0, 0], sizes = [4, 32], strides = [1, 1]} : vector<4x96xf32> to vector<4x32xf32>
    %156 = arith.addf %154, %155 : vector<4x32xf32>
    %157 = arith.negf %156 : vector<4x32xf32>
    %158 = math.exp %157 : vector<4x32xf32>
    %cst_37 = arith.constant 1.000000e+00 : f32
    %159 = vector.broadcast %cst_37 : f32 to vector<4x32xf32>
    %160 = arith.addf %159, %158 : vector<4x32xf32>
    %161 = arith.divf %159, %160 : vector<4x32xf32>
    %162 = vector.extract_strided_slice %152 {offsets = [0, 32], sizes = [4, 32], strides = [1, 1]} : vector<4x96xf32> to vector<4x32xf32>
    %163 = vector.extract_strided_slice %153 {offsets = [0, 32], sizes = [4, 32], strides = [1, 1]} : vector<4x96xf32> to vector<4x32xf32>
    %164 = arith.addf %162, %163 : vector<4x32xf32>
    %165 = arith.negf %164 : vector<4x32xf32>
    %166 = math.exp %165 : vector<4x32xf32>
    %cst_38 = arith.constant 1.000000e+00 : f32
    %167 = vector.broadcast %cst_38 : f32 to vector<4x32xf32>
    %168 = arith.addf %167, %166 : vector<4x32xf32>
    %169 = arith.divf %167, %168 : vector<4x32xf32>
    %170 = vector.extract_strided_slice %152 {offsets = [0, 64], sizes = [4, 32], strides = [1, 1]} : vector<4x96xf32> to vector<4x32xf32>
    %171 = vector.extract_strided_slice %153 {offsets = [0, 64], sizes = [4, 32], strides = [1, 1]} : vector<4x96xf32> to vector<4x32xf32>
    %172 = vector.broadcast %30 : vector<1x32xf32> to vector<4x32xf32>
    %173 = arith.addf %171, %172 : vector<4x32xf32>
    %174 = arith.mulf %161, %173 : vector<4x32xf32>
    %175 = arith.addf %170, %174 : vector<4x32xf32>
    %176 = math.tanh %175 : vector<4x32xf32>
    %cst_39 = arith.constant 1.000000e+00 : f32
    %177 = vector.broadcast %cst_39 : f32 to vector<4x32xf32>
    %178 = arith.subf %177, %169 : vector<4x32xf32>
    %179 = arith.mulf %178, %176 : vector<4x32xf32>
    %180 = arith.mulf %169, %151 : vector<4x32xf32>
    %181 = arith.addf %179, %180 : vector<4x32xf32>
    %182 = vector.extract_strided_slice %22 {offsets = [20, 0], sizes = [4, 96], strides = [1, 1]} : vector<32x96xf32> to vector<4x96xf32>
    %cst_40 = arith.constant dense<0.000000e+00> : vector<4x96xf32>
    %183 = tpu.matmul %181, %29, %cst_40 {dimension_numbers = #tpu.dot_dimension_numbers<[1], [0], [0], [1], [0, 0, 1, 1], [], []>} : vector<4x32xf32>, vector<32x96xf32>, vector<4x96xf32> -> vector<4x96xf32>
    %184 = vector.extract_strided_slice %182 {offsets = [0, 0], sizes = [4, 32], strides = [1, 1]} : vector<4x96xf32> to vector<4x32xf32>
    %185 = vector.extract_strided_slice %183 {offsets = [0, 0], sizes = [4, 32], strides = [1, 1]} : vector<4x96xf32> to vector<4x32xf32>
    %186 = arith.addf %184, %185 : vector<4x32xf32>
    %187 = arith.negf %186 : vector<4x32xf32>
    %188 = math.exp %187 : vector<4x32xf32>
    %cst_41 = arith.constant 1.000000e+00 : f32
    %189 = vector.broadcast %cst_41 : f32 to vector<4x32xf32>
    %190 = arith.addf %189, %188 : vector<4x32xf32>
    %191 = arith.divf %189, %190 : vector<4x32xf32>
    %192 = vector.extract_strided_slice %182 {offsets = [0, 32], sizes = [4, 32], strides = [1, 1]} : vector<4x96xf32> to vector<4x32xf32>
    %193 = vector.extract_strided_slice %183 {offsets = [0, 32], sizes = [4, 32], strides = [1, 1]} : vector<4x96xf32> to vector<4x32xf32>
    %194 = arith.addf %192, %193 : vector<4x32xf32>
    %195 = arith.negf %194 : vector<4x32xf32>
    %196 = math.exp %195 : vector<4x32xf32>
    %cst_42 = arith.constant 1.000000e+00 : f32
    %197 = vector.broadcast %cst_42 : f32 to vector<4x32xf32>
    %198 = arith.addf %197, %196 : vector<4x32xf32>
    %199 = arith.divf %197, %198 : vector<4x32xf32>
    %200 = vector.extract_strided_slice %182 {offsets = [0, 64], sizes = [4, 32], strides = [1, 1]} : vector<4x96xf32> to vector<4x32xf32>
    %201 = vector.extract_strided_slice %183 {offsets = [0, 64], sizes = [4, 32], strides = [1, 1]} : vector<4x96xf32> to vector<4x32xf32>
    %202 = vector.broadcast %30 : vector<1x32xf32> to vector<4x32xf32>
    %203 = arith.addf %201, %202 : vector<4x32xf32>
    %204 = arith.mulf %191, %203 : vector<4x32xf32>
    %205 = arith.addf %200, %204 : vector<4x32xf32>
    %206 = math.tanh %205 : vector<4x32xf32>
    %cst_43 = arith.constant 1.000000e+00 : f32
    %207 = vector.broadcast %cst_43 : f32 to vector<4x32xf32>
    %208 = arith.subf %207, %199 : vector<4x32xf32>
    %209 = arith.mulf %208, %206 : vector<4x32xf32>
    %210 = arith.mulf %199, %181 : vector<4x32xf32>
    %211 = arith.addf %209, %210 : vector<4x32xf32>
    %212 = vector.extract_strided_slice %22 {offsets = [24, 0], sizes = [4, 96], strides = [1, 1]} : vector<32x96xf32> to vector<4x96xf32>
    %cst_44 = arith.constant dense<0.000000e+00> : vector<4x96xf32>
    %213 = tpu.matmul %211, %29, %cst_44 {dimension_numbers = #tpu.dot_dimension_numbers<[1], [0], [0], [1], [0, 0, 1, 1], [], []>} : vector<4x32xf32>, vector<32x96xf32>, vector<4x96xf32> -> vector<4x96xf32>
    %214 = vector.extract_strided_slice %212 {offsets = [0, 0], sizes = [4, 32], strides = [1, 1]} : vector<4x96xf32> to vector<4x32xf32>
    %215 = vector.extract_strided_slice %213 {offsets = [0, 0], sizes = [4, 32], strides = [1, 1]} : vector<4x96xf32> to vector<4x32xf32>
    %216 = arith.addf %214, %215 : vector<4x32xf32>
    %217 = arith.negf %216 : vector<4x32xf32>
    %218 = math.exp %217 : vector<4x32xf32>
    %cst_45 = arith.constant 1.000000e+00 : f32
    %219 = vector.broadcast %cst_45 : f32 to vector<4x32xf32>
    %220 = arith.addf %219, %218 : vector<4x32xf32>
    %221 = arith.divf %219, %220 : vector<4x32xf32>
    %222 = vector.extract_strided_slice %212 {offsets = [0, 32], sizes = [4, 32], strides = [1, 1]} : vector<4x96xf32> to vector<4x32xf32>
    %223 = vector.extract_strided_slice %213 {offsets = [0, 32], sizes = [4, 32], strides = [1, 1]} : vector<4x96xf32> to vector<4x32xf32>
    %224 = arith.addf %222, %223 : vector<4x32xf32>
    %225 = arith.negf %224 : vector<4x32xf32>
    %226 = math.exp %225 : vector<4x32xf32>
    %cst_46 = arith.constant 1.000000e+00 : f32
    %227 = vector.broadcast %cst_46 : f32 to vector<4x32xf32>
    %228 = arith.addf %227, %226 : vector<4x32xf32>
    %229 = arith.divf %227, %228 : vector<4x32xf32>
    %230 = vector.extract_strided_slice %212 {offsets = [0, 64], sizes = [4, 32], strides = [1, 1]} : vector<4x96xf32> to vector<4x32xf32>
    %231 = vector.extract_strided_slice %213 {offsets = [0, 64], sizes = [4, 32], strides = [1, 1]} : vector<4x96xf32> to vector<4x32xf32>
    %232 = vector.broadcast %30 : vector<1x32xf32> to vector<4x32xf32>
    %233 = arith.addf %231, %232 : vector<4x32xf32>
    %234 = arith.mulf %221, %233 : vector<4x32xf32>
    %235 = arith.addf %230, %234 : vector<4x32xf32>
    %236 = math.tanh %235 : vector<4x32xf32>
    %cst_47 = arith.constant 1.000000e+00 : f32
    %237 = vector.broadcast %cst_47 : f32 to vector<4x32xf32>
    %238 = arith.subf %237, %229 : vector<4x32xf32>
    %239 = arith.mulf %238, %236 : vector<4x32xf32>
    %240 = arith.mulf %229, %211 : vector<4x32xf32>
    %241 = arith.addf %239, %240 : vector<4x32xf32>
    %242 = vector.extract_strided_slice %22 {offsets = [28, 0], sizes = [4, 96], strides = [1, 1]} : vector<32x96xf32> to vector<4x96xf32>
    %cst_48 = arith.constant dense<0.000000e+00> : vector<4x96xf32>
    %243 = tpu.matmul %241, %29, %cst_48 {dimension_numbers = #tpu.dot_dimension_numbers<[1], [0], [0], [1], [0, 0, 1, 1], [], []>} : vector<4x32xf32>, vector<32x96xf32>, vector<4x96xf32> -> vector<4x96xf32>
    %244 = vector.extract_strided_slice %242 {offsets = [0, 0], sizes = [4, 32], strides = [1, 1]} : vector<4x96xf32> to vector<4x32xf32>
    %245 = vector.extract_strided_slice %243 {offsets = [0, 0], sizes = [4, 32], strides = [1, 1]} : vector<4x96xf32> to vector<4x32xf32>
    %246 = arith.addf %244, %245 : vector<4x32xf32>
    %247 = arith.negf %246 : vector<4x32xf32>
    %248 = math.exp %247 : vector<4x32xf32>
    %cst_49 = arith.constant 1.000000e+00 : f32
    %249 = vector.broadcast %cst_49 : f32 to vector<4x32xf32>
    %250 = arith.addf %249, %248 : vector<4x32xf32>
    %251 = arith.divf %249, %250 : vector<4x32xf32>
    %252 = vector.extract_strided_slice %242 {offsets = [0, 32], sizes = [4, 32], strides = [1, 1]} : vector<4x96xf32> to vector<4x32xf32>
    %253 = vector.extract_strided_slice %243 {offsets = [0, 32], sizes = [4, 32], strides = [1, 1]} : vector<4x96xf32> to vector<4x32xf32>
    %254 = arith.addf %252, %253 : vector<4x32xf32>
    %255 = arith.negf %254 : vector<4x32xf32>
    %256 = math.exp %255 : vector<4x32xf32>
    %cst_50 = arith.constant 1.000000e+00 : f32
    %257 = vector.broadcast %cst_50 : f32 to vector<4x32xf32>
    %258 = arith.addf %257, %256 : vector<4x32xf32>
    %259 = arith.divf %257, %258 : vector<4x32xf32>
    %260 = vector.extract_strided_slice %242 {offsets = [0, 64], sizes = [4, 32], strides = [1, 1]} : vector<4x96xf32> to vector<4x32xf32>
    %261 = vector.extract_strided_slice %243 {offsets = [0, 64], sizes = [4, 32], strides = [1, 1]} : vector<4x96xf32> to vector<4x32xf32>
    %262 = vector.broadcast %30 : vector<1x32xf32> to vector<4x32xf32>
    %263 = arith.addf %261, %262 : vector<4x32xf32>
    %264 = arith.mulf %251, %263 : vector<4x32xf32>
    %265 = arith.addf %260, %264 : vector<4x32xf32>
    %266 = math.tanh %265 : vector<4x32xf32>
    %cst_51 = arith.constant 1.000000e+00 : f32
    %267 = vector.broadcast %cst_51 : f32 to vector<4x32xf32>
    %268 = arith.subf %267, %259 : vector<4x32xf32>
    %269 = arith.mulf %268, %266 : vector<4x32xf32>
    %270 = arith.mulf %259, %241 : vector<4x32xf32>
    %271 = arith.addf %269, %270 : vector<4x32xf32>
    %cst_52 = arith.constant 0.000000e+00 : f32
    %272 = vector.broadcast %cst_52 : f32 to vector<4x32xf32>
    %c0_53 = arith.constant 0 : index
    %c0_54 = arith.constant 0 : index
    %273 = vector.load %arg6[%c0_53, %c0_54] : memref<32x96xf32, #tpu.memory_space<vmem>>, vector<32x96xf32>
    %c0_55 = arith.constant 0 : index
    %c0_56 = arith.constant 0 : index
    %274 = vector.load %arg8[%c0_55, %c0_56] : memref<1x32xf32, #tpu.memory_space<vmem>>, vector<1x32xf32>
    %cst_57 = arith.constant dense<0.000000e+00> : vector<4x96xf32>
    %275 = tpu.matmul %272, %273, %cst_57 {dimension_numbers = #tpu.dot_dimension_numbers<[1], [0], [0], [1], [0, 0, 1, 1], [], []>} : vector<4x32xf32>, vector<32x96xf32>, vector<4x96xf32> -> vector<4x96xf32>
    %276 = vector.extract_strided_slice %28 {offsets = [0, 0], sizes = [4, 32], strides = [1, 1]} : vector<4x96xf32> to vector<4x32xf32>
    %277 = vector.extract_strided_slice %275 {offsets = [0, 0], sizes = [4, 32], strides = [1, 1]} : vector<4x96xf32> to vector<4x32xf32>
    %278 = arith.addf %276, %277 : vector<4x32xf32>
    %279 = arith.negf %278 : vector<4x32xf32>
    %280 = math.exp %279 : vector<4x32xf32>
    %cst_58 = arith.constant 1.000000e+00 : f32
    %281 = vector.broadcast %cst_58 : f32 to vector<4x32xf32>
    %282 = arith.addf %281, %280 : vector<4x32xf32>
    %283 = arith.divf %281, %282 : vector<4x32xf32>
    %284 = vector.extract_strided_slice %28 {offsets = [0, 32], sizes = [4, 32], strides = [1, 1]} : vector<4x96xf32> to vector<4x32xf32>
    %285 = vector.extract_strided_slice %275 {offsets = [0, 32], sizes = [4, 32], strides = [1, 1]} : vector<4x96xf32> to vector<4x32xf32>
    %286 = arith.addf %284, %285 : vector<4x32xf32>
    %287 = arith.negf %286 : vector<4x32xf32>
    %288 = math.exp %287 : vector<4x32xf32>
    %cst_59 = arith.constant 1.000000e+00 : f32
    %289 = vector.broadcast %cst_59 : f32 to vector<4x32xf32>
    %290 = arith.addf %289, %288 : vector<4x32xf32>
    %291 = arith.divf %289, %290 : vector<4x32xf32>
    %292 = vector.extract_strided_slice %28 {offsets = [0, 64], sizes = [4, 32], strides = [1, 1]} : vector<4x96xf32> to vector<4x32xf32>
    %293 = vector.extract_strided_slice %275 {offsets = [0, 64], sizes = [4, 32], strides = [1, 1]} : vector<4x96xf32> to vector<4x32xf32>
    %294 = vector.broadcast %274 : vector<1x32xf32> to vector<4x32xf32>
    %295 = arith.addf %293, %294 : vector<4x32xf32>
    %296 = arith.mulf %283, %295 : vector<4x32xf32>
    %297 = arith.addf %292, %296 : vector<4x32xf32>
    %298 = math.tanh %297 : vector<4x32xf32>
    %cst_60 = arith.constant 1.000000e+00 : f32
    %299 = vector.broadcast %cst_60 : f32 to vector<4x32xf32>
    %300 = arith.subf %299, %291 : vector<4x32xf32>
    %301 = arith.mulf %300, %298 : vector<4x32xf32>
    %302 = arith.mulf %291, %272 : vector<4x32xf32>
    %303 = arith.addf %301, %302 : vector<4x32xf32>
    %c0_61 = arith.constant 0 : index
    %c0_62 = arith.constant 0 : index
    %304 = vector.load %arg13[%c0_61, %c0_62] : memref<4x66xf32, #tpu.memory_space<vmem>>, vector<4x32xf32>
    tpu.vector_store %arg13[%c0_61, %c0_62], %271 {strides = array<i32>} : memref<4x66xf32, #tpu.memory_space<vmem>>, vector<4x32xf32>,
    %c0_63 = arith.constant 0 : index
    %c32 = arith.constant 32 : index
    %305 = vector.load %arg13[%c0_63, %c32] : memref<4x66xf32, #tpu.memory_space<vmem>>, vector<4x32xf32>
    tpu.vector_store %arg13[%c0_63, %c32], %303 {strides = array<i32>} : memref<4x66xf32, #tpu.memory_space<vmem>>, vector<4x32xf32>,
    %c0_64 = arith.constant 0 : index
    %c0_65 = arith.constant 0 : index
    %306 = vector.load %arg9[%c0_64, %c0_65] : memref<4x2xf32, #tpu.memory_space<vmem>>, vector<4x2xf32>
    %c0_66 = arith.constant 0 : index
    %c64 = arith.constant 64 : index
    %307 = vector.load %arg13[%c0_66, %c64] : memref<4x66xf32, #tpu.memory_space<vmem>>, vector<4x2xf32>
    tpu.vector_store %arg13[%c0_66, %c64], %306 {strides = array<i32>} : memref<4x66xf32, #tpu.memory_space<vmem>>, vector<4x2xf32>,
    %c0_67 = arith.constant 0 : index
    %c0_68 = arith.constant 0 : index
    %308 = vector.load %arg13[%c0_67, %c0_68] : memref<4x66xf32, #tpu.memory_space<vmem>>, vector<4x66xf32>
    %c0_69 = arith.constant 0 : index
    %c0_70 = arith.constant 0 : index
    %309 = vector.load %arg10[%c0_69, %c0_70] : memref<66x2xf32, #tpu.memory_space<vmem>>, vector<66x2xf32>
    %cst_71 = arith.constant dense<0.000000e+00> : vector<4x2xf32>
    %310 = tpu.matmul %308, %309, %cst_71 {dimension_numbers = #tpu.dot_dimension_numbers<[1], [0], [0], [1], [0, 0, 1, 1], [], []>} : vector<4x66xf32>, vector<66x2xf32>, vector<4x2xf32> -> vector<4x2xf32>
    %c0_72 = arith.constant 0 : index
    %c0_73 = arith.constant 0 : index
    %311 = vector.load %arg11[%c0_72, %c0_73] : memref<1x2xf32, #tpu.memory_space<vmem>>, vector<1x2xf32>
    %312 = vector.broadcast %311 : vector<1x2xf32> to vector<4x2xf32>
    %313 = arith.addf %310, %312 : vector<4x2xf32>
    %cst_74 = arith.constant dense<0xFF800000> : vector<4xf32>
    %314 = vector.multi_reduction <maximumf>, %313, %cst_74 [1] : vector<4x2xf32> to vector<4xf32>
    %315 = vector.shape_cast %314 : vector<4xf32> to vector<4x1xf32>
    %316 = vector.broadcast %315 : vector<4x1xf32> to vector<4x2xf32>
    %317 = arith.subf %313, %316 : vector<4x2xf32>
    %318 = math.exp %317 : vector<4x2xf32>
    %cst_75 = arith.constant dense<0.000000e+00> : vector<4xf32>
    %319 = vector.multi_reduction <add>, %318, %cst_75 [1] : vector<4x2xf32> to vector<4xf32>
    %320 = vector.shape_cast %319 : vector<4xf32> to vector<4x1xf32>
    %321 = math.log %320 : vector<4x1xf32>
    %322 = vector.broadcast %321 : vector<4x1xf32> to vector<4x2xf32>
    %323 = arith.subf %317, %322 : vector<4x2xf32>
    %c0_76 = arith.constant 0 : index
    %c0_77 = arith.constant 0 : index
    %324 = vector.load %arg12[%c0_76, %c0_77] : memref<4x2xf32, #tpu.memory_space<vmem>>, vector<4x2xf32>
    tpu.vector_store %arg12[%c0_76, %c0_77], %323 {strides = array<i32>} : memref<4x2xf32, #tpu.memory_space<vmem>>, vector<4x2xf32>,
    return
  }
}

</mosaic_0001>

<bundles_post_ra>
// kernel: bigru_forward.1
= control target key start
LH: loop header
LB: loop body
LE: loop exit
PB: predicated region body
PF: predicated region fallthrough
CT: control target
= control target key end

     0   :  { %vm48_vm0 = vcmask 130048   ;;  %s2159_s0 = inlined_call_operand.vmem [shape: f32[32,16], index: 0, kind: input, shape index: {}]   ;;  %s2160_s1 = inlined_call_operand.vmem [shape: f32[16,96], index: 1, kind: input, shape index: {}]   ;;  %s2161_s2 = inlined_call_operand.vmem [shape: f32[32,96], index: 2, kind: input, shape index: {}]   ;;  %s2162_s3 = inlined_call_operand.vmem [shape: f32[1,96], index: 3, kind: input, shape index: {}]   ;;  %s2163_s4 = inlined_call_operand.vmem [shape: f32[1,32], index: 4, kind: input, shape index: {}]   ;;  %s2164_s5 = inlined_call_operand.vmem [shape: f32[16,96], index: 5, kind: input, shape index: {}]   ;;  %s2165_s6 = inlined_call_operand.vmem [shape: f32[32,96], index: 6, kind: input, shape index: {}]   ;;  %s2166_s7 = inlined_call_operand.vmem [shape: f32[1,96], index: 7, kind: input, shape index: {}]   ;;  %s2167_s8 = inlined_call_operand.vmem [shape: f32[1,32], index: 8, kind: input, shape index: {}]   ;;  %s2168_s9 = inlined_call_operand.vmem [shape: f32[4,2], index: 9, kind: input, shape index: {}]   ;;  %s2169_s10 = inlined_call_operand.vmem [shape: f32[66,2], index: 10, kind: input, shape index: {}]   ;;  %s2170_s11 = inlined_call_operand.vmem [shape: f32[1,2], index: 11, kind: input, shape index: {}]   ;;  %s2171_s12 = inlined_call_operand.vmem [shape: f32[4,2], index: 12, kind: output, shape index: {0}]   ;;  %s2172_s13 = inlined_call_operand.hbm [shape: f32[4,66], index: 13, kind: output, shape index: {1}]  }
   0x1   :  { %v44_v0 = vld [vmem:[%s2159_s0] sm:$0xff]  ;;  %v45_v1 = vld [vmem:[%s2159_s0 + $0x8] sm:$0xff]  ;;  %v46_v2 = vld [vmem:[%s2159_s0 + $0x10] sm:$0xff] }
   0x2   :  { %v47_v3 = vld [vmem:[%s2159_s0 + $0x18] sm:$0xff]  ;;  %v49_v4 = vsel %vm48_vm0, %v44_v0, 0.0  ;;  %v50_v5 = vsel %vm48_vm0, %v45_v1, 0.0  ;;  %v52_v6 = vsel %vm48_vm0, %v46_v2, 0.0 }
   0x3   :  { %19 = vsyncpa [#allocation3], 0  ;;  %v51_v7 = vadd.f32 %v50_v5, %v49_v4  ;;  %v54_v8 = vsel %vm48_vm0, %v47_v3, 0.0  ;;  %v105_v34 = vld [vmem:[%s2160_s1] sm:$0xff]  ;;  %v106_v35 = vld [vmem:[%s2160_s1 + $0x8] sm:$0xff]  ;;  %v1801_v41 = vmov 0.0|0.0  }
   0x4   :  { %v1632_v36 = vpack.c.bf16 %v106_v35, %v105_v34  ;;  %1645 = vmatprep.subr.bf16.mxu1 %v1801_v41  ;;  %v293_v44 = vld [vmem:[%s2161_s2] sm:$0xff]  ;;  %v294_v45 = vld [vmem:[%s2161_s2 + $0x8] sm:$0xff]  ;;  %vm1802_vm1 = vmmov 0   ;;  %v1803_v46 = vmov 0.0   ;;  %v295_v49 = vld [vmem:[%s2161_s2 + $0x10] sm:$0xff]  ;;  %s1804_s30 = smov 64  }
   0x5   :  { %v53_v9 = vadd.f32 %v52_v6, %v51_v7  ;;  %1531 = vmatprep.mubr.msk.f32.mxu1 %vm1802_vm1, %v1803_v46  ;;  %v1917_v48 = vpack.c.bf16 %v294_v45, %v293_v44  ;;  %v296_v50 = vld [vmem:[%s2161_s2 + $0x18] sm:$0xff]  ;;  %v1411_v52 = vld [vmem:[%s2163_s4] ss:$0 sm:$0xff]  ;;  %v212_v56 = vld [vmem:[%s2164_s5 + $0x8] sm:$0xff]  ;;  %vm298_vm2 = vcmask 261120   ;;  %vm1297_vm3 = vcmask 1041408  }
   0x6   :  { %1633 = vmatprep.subr.bf16.mxu0 %v1632_v36  ;;  %v1927_v51 = vpack.c.bf16 %v296_v50, %v295_v49  ;;  %384 = vrot.lane.b32.xlu1 %v1411_v52, %s1804_s30  ;;  %v211_v55 = vld [vmem:[%s2164_s5] sm:$0xff]  ;;  %vm1265_vm4 = vcmask 261124   ;;  %vm1267_vm5 = vcmask 519424   ;;  %vm1274_vm6 = vcmask 536064   ;;  %s1806_s25 = smov [#allocation2]  }
   0x7   :  { %v55_v10 = vadd.f32 %v54_v8, %v53_v9  ;;  %1635 = vmatpush3.bf16.msra.mxu0 %v1632_v36  ;;  %1647 = vmatpush3.bf16.msra.mxu1 %v1917_v48  ;;  %v1637_v60 = vpack.c.bf16 %v212_v56, %v211_v55  ;;  %vm1293_vm7 = vcmask 539648   ;;  %vm1371_vm8 = vcmask 11264   ;;  %s1393_s26 = sshll.u32 %s1806_s25, 4  ;;  %s1394_s26 = int_to_ptr.vmem [resolvable:$true] %s1393_s26 }
   0x8   :  { %1636 = vmatprep.subr.bf16.mxu0 %v1801_v41  ;;  %1648 = vmatprep.subr.bf16.mxu1 %v1801_v41  ;;  %p1782_p1 = scmp.lt.s32.totalorder %s1394_s26, %s1394_s26 }
   0x9   :  { %56 = vadd.xlane.f32.xlu0 %v55_v10 }
   0xb   :  { %1650 = vmatpush3.bf16.msra.mxu1 %v1927_v51 }
   0xc   :  { %1657 = vmatprep.subr.bf16.mxu1 %v1801_v41 }
  0x78   :  { %v1974_v10 = vpop.permute.xlu1 %384 }
  0x96   :  { %v57_v11 = vpop.xlane.xlu0 %56 }
  0x97   :  { %v58_v12 = vrot.slane %v57_v11, 4 }
  0x99   :  { %v59_v13 = vadd.f32 %v58_v12, %v57_v11 }
  0x9b   :  { %v60_v14 = vrot.slane %v59_v13, 2 }
  0x9d   :  { %v61_v15 = vadd.f32 %v60_v14, %v59_v13 }
  0x9f   :  { %v62_v16 = vrot.slane %v61_v15, 1 }
  0xa1   :  { %v63_v17 = vadd.f32 %v62_v16, %v61_v15 }
  0xa3   :  { %1705 = vpush %v63_v17 }
  0xd4   :  { %s1706_s0 = spop %1705 }
  0xd5   :  { %s67_s16 = smul.f32 0.001953125, %s1706_s0 }
  0xd7   :  { %v68_v18 = vstv %s67_s16 }
  0xd8   :  { %v69_v19 = vsub.f32 %v44_v0, %v68_v18  ;;  %v70_v20 = vsub.f32 %v45_v1, %v68_v18  ;;  %v71_v21 = vsub.f32 %v46_v2, %v68_v18  ;;  %v1893_v22 = vsub.f32 %v47_v3, %v68_v18  ;;  %v1403_v0 = vld [vmem:[%s2162_s3] ss:$0 sm:$0xff]  ;;  %s1805_s3 = smov 96  }
  0xda   :  { %v73_v23 = vmul.f32 %v69_v19, %v69_v19  ;;  %v74_v24 = vmul.f32 %v70_v20, %v70_v20  ;;  %v75_v25 = vmul.f32 %v71_v21, %v71_v21  ;;  %v76_v26 = vmul.f32 %v1893_v22, %v1893_v22 }
  0xdc   :  { %v77_v27 = vsel %vm48_vm0, %v73_v23, 0.0  ;;  %v78_v28 = vsel %vm48_vm0, %v74_v24, 0.0  ;;  %v80_v30 = vsel %vm48_vm0, %v75_v25, 0.0  ;;  %v82_v32 = vsel %vm48_vm0, %v76_v26, 0.0 }
  0xdd   :  { %v79_v29 = vadd.f32 %v78_v28, %v77_v27 }
  0xdf   :  { %v81_v31 = vadd.f32 %v80_v30, %v79_v29 }
  0xe1   :  { %v83_v33 = vadd.f32 %v82_v32, %v81_v31 }
  0xe3   :  { %84 = vadd.xlane.f32.xlu0 %v83_v33 }
 0x170   :  { %v85_v37 = vpop.xlane.xlu0 %84 }
 0x171   :  { %v86_v38 = vrot.slane %v85_v37, 4 }
 0x173   :  { %v87_v39 = vadd.f32 %v86_v38, %v85_v37 }
 0x175   :  { %v88_v40 = vrot.slane %v87_v39, 2 }
 0x177   :  { %v89_v42 = vadd.f32 %v88_v40, %v87_v39 }
 0x179   :  { %v90_v43 = vrot.slane %v89_v42, 1 }
 0x17b   :  { %v91_v47 = vadd.f32 %v90_v43, %v89_v42 }
 0x17d   :  { %1707 = vpush %v91_v47 }
 0x1ae   :  { %s1708_s14 = spop %1707 }
 0x1af   :  { %s95_s15 = smul.f32 0.001953125, %s1708_s14 }
 0x1b1   :  { %s96_s0 = sadd.f32 1e-05, %s95_s15 }
 0x1b3   :  { %v97_v53 = vstv %s96_s0 }
 0x1b4   :  { %1717 = vrsqrt.f32 %v97_v53 }
 0x1be   :  { %v1718_v54 = vpop.eup %1717 }
 0x1bf   :  { %1709 = vpush %v1718_v54 }
 0x1f0   :  { %s1710_s19 = spop %1709 }
 0x1f1   :  { %v100_v57 = vstv %s1710_s19 }
 0x1f2   :  { %v102_v58 = vmul.f32 %v100_v57, %v70_v20  ;;  %v101_v59 = vmul.f32 %v100_v57, %v69_v19  ;;  %v103_v61 = vmul.f32 %v100_v57, %v71_v21  ;;  %v104_v62 = vmul.f32 %v100_v57, %v1893_v22 }
 0x1f4   :  { %1499 = vmatprep.mubr.msk.f32.mxu0 %vm48_vm0, %v101_v59  ;;  %v220_v63 = vrot.slane %v104_v62, 4 }
 0x1f5   :  { %1500 = vmatmul.mubr.msk.f32.vlgmr.msra.gmra.mrb[0].mxu0 %vm48_vm0, %v102_v58 }
 0x1f6   :  { %1638 = vmatpush3.bf16.msra.mxu0 %v1637_v60  ;;  %1502 = vmatprep.mubr.msk.f32.mxu0 %vm48_vm0, %v103_v61 }
 0x1f7   :  { %1639 = vmatprep.subr.bf16.mxu0 %v1801_v41 }
 0x1f9   :  { %1503 = vmatmul.mubr.msk.f32.gmra.mrb[2].mxu0 %vm48_vm0, %v104_v62 }
 0x1fa   :  { %1509 = vmatprep.mubr.msk.f32.mxu0 %vm1802_vm1, %v1803_v46 }
 0x1fd   :  { %1510 = vmatmul.mubr.msk.f32.vlgmr.msra.gmra.mrb[4].mxu0 %vm48_vm0, %v220_v63 }
 0x1fe   :  { %1641 = vmatpush3.bf16.msra.mxu0 %v1917_v48  ;;  %1520 = vmatprep.mubr.msk.f32.mxu0 %vm1802_vm1, %v1803_v46 }
 0x1ff   :  { %1642 = vmatprep.subr.bf16.mxu0 %v1801_v41 }
 0x202   :  { %1644 = vmatpush3.bf16.msra.mxu0 %v1927_v51 }
 0x203   :  { %1651 = vmatprep.subr.bf16.mxu0 %v1801_v41 }
 0x205   :  { %1521 = vmatmul.mubr.f32.vlgmr.msra.gmra.mrb[6].mxu0 %v1803_v46 }
 0x206   :  { %1653 = vmatpush3.bf16.msra.mxu0 %v1917_v48  ;;  %1542 = vmatprep.mubr.msk.f32.mxu0 %vm1802_vm1, %v1803_v46 }
 0x207   :  { %1654 = vmatprep.subr.bf16.mxu0 %v1801_v41 }
 0x20a   :  { %1656 = vmatpush3.bf16.msra.mxu0 %v1927_v51 }
 0x20b   :  { %1663 = vmatprep.subr.bf16.mxu0 %v1801_v41 }
 0x2c8   :  { %v1501_v1 = vpop.f32.mrb[0].mxu0 }
 0x2c9   :  { %v1966_v2 = vadd.f32 %v1501_v1, %v1403_v0  ;;  %v192_v3 = vpop.f32.mrb[1].mxu0 }
 0x2ca   :  { %v193_v14 = vadd.f32 %v1403_v0, %v192_v3 }
 0x2cc   :  { %v1504_v4 = vpop.f32.mrb[2].mxu0 }
 0x2cd   :  { %v1968_v5 = vadd.f32 %v1504_v4, %v1403_v0  ;;  %v202_v6 = vpop.f32.mrb[3].mxu0 }
 0x2ce   :  { %v1970_v7 = vadd.f32 %v1403_v0, %v202_v6 }
 0x2d0   :  { %v1972_v8 = vpop.f32.mrb[4].mxu0 }
 0x2d1   :  { %v1511_v9 = vpop.f32.mrb[5].mxu0 }
 0x2d8   :  { %v368_v11 = vpop.f32.mrb[6].mxu0 }
 0x2d9   :  { %v387_v12 = vadd.f32 %v1974_v10, %v368_v11  ;;  %v1522_v13 = vpop.f32.mrb[7].mxu0  ;;  %v372_v15 = vadd.f32 %v368_v11, %v193_v14 }
 0x2db   :  { %389 = vrot.lane.b32.xlu1 %v387_v12, %s1804_s30  ;;  %v1410_v16 = vmul.f32 -1.442695, %v372_v15 }
 0x2dd   :  { %1719 = vpow2.f32 %v1410_v16 }
 0x2e7   :  { %v1720_v17 = vpop.eup %1719 }
 0x2e8   :  { %v376_v18 = vadd.f32 1.0, %v1720_v17 }
 0x2ea   :  { %1721 = vrcp.f32 %v376_v18 }
 0x2f4   :  { %v1722_v19 = vpop.eup %1721 }
 0x2f5   :  { %v399_v25 = vsub.f32 1.0, %v1722_v19  ;;  %v405_v27 = vmul.f32 0.0, %v1722_v19 }
 0x34d   :  { %v390_v20 = vpop.permute.xlu1 %389 }
 0x34e   :  { %v392_v21 = vmul.f32 %v1722_v19, %v390_v20 }
 0x350   :  { %394 = vrot.lane.b32.xlu0 %v392_v21, %s1804_s30 }
 0x3c2   :  { %v395_v22 = vpop.permute.xlu0 %394 }
 0x3c3   :  { %v397_v23 = vadd.f32 %v395_v22, %v193_v14 }
 0x3c5   :  { %1723 = vtanh.f32 %v397_v23 }
 0x3cf   :  { %v1724_v24 = vpop.eup %1723 }
 0x3d0   :  { %401 = vrot.lane.b32.xlu1 %v1724_v24, %s1805_s3 }
 0x442   :  { %v402_v26 = vpop.permute.xlu1 %401 }
 0x443   :  { %v404_v28 = vmul.f32 %v402_v26, %v399_v25 }
 0x445   :  { %v406_v29 = vadd.f32 %v405_v27, %v404_v28 }
 0x447   :  { %408 = vrot.lane.b32.xlu1 %v406_v29, %s1805_s3  ;;  %v511_v49 = vrot.slane %v406_v29, 4 }
 0x4b9   :  { %v409_v30 = vpop.permute.xlu1 %408 }
 0x4ba   :  { %1532 = vmatmul.mubr.msk.f32.vlgmr.msra.gmra.mrb[0].mxu1 %vm298_vm2, %v409_v30 }
 0x4bb   :  { %1659 = vmatpush3.bf16.msra.mxu1 %v1917_v48  ;;  %1553 = vmatprep.mubr.msk.f32.mxu1 %vm1802_vm1, %v1803_v46 }
 0x4bc   :  { %1660 = vmatprep.subr.bf16.mxu1 %v1801_v41 }
 0x4bf   :  { %1662 = vmatpush3.bf16.msra.mxu1 %v1927_v51 }
 0x4c0   :  { %1669 = vmatprep.subr.bf16.mxu1 %v1801_v41 }
 0x58d   :  { %v478_v31 = vpop.f32.mrb[0].mxu1 }
 0x58e   :  { %v492_v32 = vadd.f32 %v478_v31, %v1974_v10  ;;  %v1533_v33 = vpop.f32.mrb[1].mxu1  ;;  %v483_v35 = vrot.slane %v478_v31, 4 }
 0x590   :  { %v494_v34 = vrot.slane %v492_v32, 4  ;;  %v485_v36 = vadd.f32 %v483_v35, %v193_v14 }
 0x592   :  { %495 = vrot.lane.b32.xlu1 %v494_v34, %s1804_s30  ;;  %v1413_v37 = vmul.f32 -1.442695, %v485_v36 }
 0x594   :  { %1725 = vpow2.f32 %v1413_v37 }
 0x59e   :  { %v1726_v38 = vpop.eup %1725 }
 0x59f   :  { %v489_v39 = vadd.f32 1.0, %v1726_v38 }
 0x5a1   :  { %1727 = vrcp.f32 %v489_v39 }
 0x5ab   :  { %v1728_v40 = vpop.eup %1727 }
 0x5ac   :  { %v505_v50 = vsub.f32 1.0, %v1728_v40  ;;  %v513_v54 = vmul.f32 %v1728_v40, %v511_v49 }
 0x604   :  { %v496_v42 = vpop.permute.xlu1 %495 }
 0x605   :  { %v498_v43 = vmul.f32 %v1728_v40, %v496_v42 }
 0x607   :  { %500 = vrot.lane.b32.xlu1 %v498_v43, %s1804_s30 }
 0x679   :  { %v501_v44 = vpop.permute.xlu1 %500 }
 0x67a   :  { %v503_v45 = vadd.f32 %v501_v44, %v193_v14 }
 0x67c   :  { %1729 = vtanh.f32 %v503_v45 }
 0x686   :  { %v1730_v47 = vpop.eup %1729 }
 0x687   :  { %507 = vrot.lane.b32.xlu1 %v1730_v47, %s1805_s3 }
 0x6f9   :  { %v508_v52 = vpop.permute.xlu1 %507 }
 0x6fa   :  { %v510_v53 = vmul.f32 %v508_v52, %v505_v50 }
 0x6fc   :  { %v514_v55 = vadd.f32 %v513_v54, %v510_v53 }
 0x6fe   :  { %v516_v56 = vrot.slane %v514_v55, 4 }
 0x700   :  { %517 = vrot.lane.b32.xlu1 %v516_v56, %s1805_s3 }
 0x772   :  { %v518_v57 = vpop.permute.xlu1 %517 }
 0x773   :  { %1543 = vmatmul.mubr.msk.f32.vlgmr.msra.gmra.mrb[8].mxu0 %vm298_vm2, %v518_v57 }
 0x774   :  { %1665 = vmatpush3.bf16.msra.mxu0 %v1917_v48  ;;  %1564 = vmatprep.mubr.msk.f32.mxu0 %vm1802_vm1, %v1803_v46 }
 0x775   :  { %1666 = vmatprep.subr.bf16.mxu0 %v1801_v41 }
 0x778   :  { %1668 = vmatpush3.bf16.msra.mxu0 %v1927_v51 }
 0x779   :  { %1675 = vmatprep.subr.bf16.mxu0 %v1801_v41 }
 0x846   :  { %v587_v58 = vpop.f32.mrb[8].mxu0 }
 0x847   :  { %v598_v59 = vadd.f32 %v587_v58, %v1974_v10  ;;  %v1544_v60 = vpop.f32.mrb[9].mxu0  ;;  %v591_v61 = vadd.f32 %v587_v58, %v1966_v2 }
 0x849   :  { %600 = vrot.lane.b32.xlu0 %v598_v59, %s1804_s30  ;;  %v1415_v62 = vmul.f32 -1.442695, %v591_v61 }
 0x84b   :  { %1731 = vpow2.f32 %v1415_v62 }
 0x855   :  { %v1732_v63 = vpop.eup %1731 }
 0x856   :  { %v595_v0 = vadd.f32 1.0, %v1732_v63 }
 0x858   :  { %1733 = vrcp.f32 %v595_v0 }
 0x862   :  { %v1734_v1 = vpop.eup %1733 }
 0x863   :  { %v610_v12 = vsub.f32 1.0, %v1734_v1  ;;  %v617_v14 = vmul.f32 %v1734_v1, %v516_v56 }
 0x8bb   :  { %v601_v3 = vpop.permute.xlu0 %600 }
 0x8bc   :  { %v603_v4 = vmul.f32 %v1734_v1, %v601_v3 }
 0x8be   :  { %605 = vrot.lane.b32.xlu1 %v603_v4, %s1804_s30 }
 0x930   :  { %v606_v6 = vpop.permute.xlu1 %605 }
 0x931   :  { %v608_v9 = vadd.f32 %v606_v6, %v1966_v2 }
 0x933   :  { %1735 = vtanh.f32 %v608_v9 }
 0x93d   :  { %v1736_v11 = vpop.eup %1735 }
 0x93e   :  { %612 = vrot.lane.b32.xlu0 %v1736_v11, %s1805_s3 }
 0x9b0   :  { %v613_v13 = vpop.permute.xlu0 %612 }
 0x9b1   :  { %v615_v15 = vmul.f32 %v613_v13, %v610_v12 }
 0x9b3   :  { %v618_v16 = vadd.f32 %v617_v14, %v615_v15 }
 0x9b5   :  { %620 = vrot.lane.b32.xlu1 %v618_v16, %s1805_s3  ;;  %v723_v33 = vrot.slane %v618_v16, 4 }
 0xa27   :  { %v621_v17 = vpop.permute.xlu1 %620 }
 0xa28   :  { %1554 = vmatmul.mubr.msk.f32.vlgmr.msra.gmra.mrb[2].mxu1 %vm298_vm2, %v621_v17 }
 0xa29   :  { %1671 = vmatpush3.bf16.msra.mxu1 %v1917_v48  ;;  %1575 = vmatprep.mubr.msk.f32.mxu1 %vm1802_vm1, %v1803_v46 }
 0xa2a   :  { %1672 = vmatprep.subr.bf16.mxu1 %v1801_v41 }
 0xa2d   :  { %1674 = vmatpush3.bf16.msra.mxu1 %v1927_v51 }
 0xa2e   :  { %1681 = vmatprep.subr.bf16.mxu1 %v1801_v41 }
 0xafb   :  { %v690_v18 = vpop.f32.mrb[2].mxu1 }
 0xafc   :  { %v704_v19 = vadd.f32 %v690_v18, %v1974_v10  ;;  %v1555_v20 = vpop.f32.mrb[3].mxu1  ;;  %v695_v22 = vrot.slane %v690_v18, 4 }
 0xafe   :  { %v706_v21 = vrot.slane %v704_v19, 4  ;;  %v697_v23 = vadd.f32 %v695_v22, %v1966_v2 }
 0xb00   :  { %707 = vrot.lane.b32.xlu0 %v706_v21, %s1804_s30  ;;  %v1417_v24 = vmul.f32 -1.442695, %v697_v23 }
 0xb02   :  { %1737 = vpow2.f32 %v1417_v24  ;;  %v1151_v24 = vld [vmem:[%s2165_s6] sm:$0xff] }
 0xb0c   :  { %v1738_v25 = vpop.eup %1737 }
 0xb0d   :  { %v701_v26 = vadd.f32 1.0, %v1738_v25 }
 0xb0f   :  { %1739 = vrcp.f32 %v701_v26  ;;  %v1153_v26 = vld [vmem:[%s2165_s6 + $0x10] sm:$0xff] }
 0xb19   :  { %v1740_v27 = vpop.eup %1739 }
 0xb1a   :  { %v717_v34 = vsub.f32 1.0, %v1740_v27  ;;  %v725_v37 = vmul.f32 %v1740_v27, %v723_v33 }
 0xb72   :  { %v708_v28 = vpop.permute.xlu0 %707 }
 0xb73   :  { %v710_v29 = vmul.f32 %v1740_v27, %v708_v28  ;;  %v1154_v27 = vld [vmem:[%s2165_s6 + $0x18] sm:$0xff] }
 0xb75   :  { %712 = vrot.lane.b32.xlu1 %v710_v29, %s1804_s30  ;;  %v1691_v29 = vpack.c.bf16 %v1154_v27, %v1153_v26  ;;  %v1281_v26 = vld [vmem:[%s2169_s10 + $0x20] sm:$0xff]  ;;  %v1282_v27 = vld [vmem:[%s2169_s10 + $0x28] sm:$0xff] }
 0xbe7   :  { %v713_v30 = vpop.permute.xlu1 %712 }
 0xbe8   :  { %v715_v31 = vadd.f32 %v713_v30, %v1966_v2 }
 0xbea   :  { %1741 = vtanh.f32 %v715_v31 }
 0xbf4   :  { %v1742_v32 = vpop.eup %1741 }
 0xbf5   :  { %719 = vrot.lane.b32.xlu0 %v1742_v32, %s1805_s3 }
 0xc67   :  { %v720_v35 = vpop.permute.xlu0 %719 }
 0xc68   :  { %v722_v36 = vmul.f32 %v720_v35, %v717_v34 }
 0xc6a   :  { %v726_v38 = vadd.f32 %v725_v37, %v722_v36 }
 0xc6c   :  { %v728_v39 = vrot.slane %v726_v38, 4 }
 0xc6e   :  { %729 = vrot.lane.b32.xlu1 %v728_v39, %s1805_s3 }
 0xce0   :  { %v730_v40 = vpop.permute.xlu1 %729 }
 0xce1   :  { %1565 = vmatmul.mubr.msk.f32.vlgmr.msra.gmra.mrb[10].mxu0 %vm298_vm2, %v730_v40 }
 0xce2   :  { %1677 = vmatpush3.bf16.msra.mxu0 %v1917_v48  ;;  %1586 = vmatprep.mubr.msk.f32.mxu0 %vm1802_vm1, %v1803_v46 }
 0xce3   :  { %1678 = vmatprep.subr.bf16.mxu0 %v1801_v41 }
 0xce6   :  { %1680 = vmatpush3.bf16.msra.mxu0 %v1927_v51 }
 0xce7   :  { %1687 = vmatprep.subr.bf16.mxu0 %v1801_v41 }
 0xdb4   :  { %v799_v2 = vpop.f32.mrb[10].mxu0 }
 0xdb5   :  { %v810_v42 = vadd.f32 %v799_v2, %v1974_v10  ;;  %v1566_v43 = vpop.f32.mrb[11].mxu0  ;;  %v803_v44 = vadd.f32 %v799_v2, %v1970_v7 }
 0xdb7   :  { %812 = vrot.lane.b32.xlu0 %v810_v42, %s1804_s30  ;;  %v1419_v45 = vmul.f32 -1.442695, %v803_v44 }
 0xdb9   :  { %1743 = vpow2.f32 %v1419_v45  ;;  %v1427_v45 = vld [vmem:[%s2167_s8] ss:$0 sm:$0xff] }
 0xdc3   :  { %v1744_v47 = vpop.eup %1743 }
 0xdc4   :  { %v807_v49 = vadd.f32 1.0, %v1744_v47 }
 0xdc6   :  { %1745 = vrcp.f32 %v807_v49 }
 0xdd0   :  { %v1746_v50 = vpop.eup %1745 }
 0xdd1   :  { %v822_v57 = vsub.f32 1.0, %v1746_v50  ;;  %v829_v59 = vmul.f32 %v1746_v50, %v728_v39 }
 0xe29   :  { %v813_v52 = vpop.permute.xlu0 %812 }
 0xe2a   :  { %v815_v53 = vmul.f32 %v1746_v50, %v813_v52 }
 0xe2c   :  { %817 = vrot.lane.b32.xlu1 %v815_v53, %s1804_s30 }
 0xe9e   :  { %v818_v54 = vpop.permute.xlu1 %817 }
 0xe9f   :  { %v820_v55 = vadd.f32 %v818_v54, %v1970_v7 }
 0xea1   :  { %1747 = vtanh.f32 %v820_v55 }
 0xeab   :  { %v1748_v56 = vpop.eup %1747 }
 0xeac   :  { %824 = vrot.lane.b32.xlu0 %v1748_v56, %s1805_s3  ;;  %v1408_v56 = vld [vmem:[%s2166_s7] ss:$0 sm:$0xff] }
 0xf1e   :  { %v825_v58 = vpop.permute.xlu0 %824 }
 0xf1f   :  { %v827_v60 = vmul.f32 %v825_v58, %v822_v57  ;;  %v290_v57 = vadd.f32 %v1408_v56, %v1972_v8 }
 0xf21   :  { %v830_v61 = vadd.f32 %v829_v59, %v827_v60 }
 0xf23   :  { %832 = vrot.lane.b32.xlu1 %v830_v61, %s1805_s3  ;;  %v935_v17 = vrot.slane %v830_v61, 4 }
 0xf95   :  { %v833_v62 = vpop.permute.xlu1 %832 }
 0xf96   :  { %1576 = vmatmul.mubr.msk.f32.vlgmr.msra.gmra.mrb[4].mxu1 %vm298_vm2, %v833_v62 }
 0xf97   :  { %1683 = vmatpush3.bf16.msra.mxu1 %v1917_v48  ;;  %1597 = vmatprep.mubr.msk.f32.mxu1 %vm1802_vm1, %v1803_v46 }
 0xf98   :  { %1684 = vmatprep.subr.bf16.mxu1 %v1801_v41 }
 0xf9b   :  { %1686 = vmatpush3.bf16.msra.mxu1 %v1927_v51 }
 0xf9c   :  { %1693 = vmatprep.subr.bf16.mxu1 %v1801_v41 }
0x1069   :  { %v902_v63 = vpop.f32.mrb[4].mxu1 }
0x106a   :  { %v916_v0 = vadd.f32 %v902_v63, %v1974_v10  ;;  %v1577_v1 = vpop.f32.mrb[5].mxu1  ;;  %v907_v4 = vrot.slane %v902_v63, 4 }
0x106c   :  { %v918_v3 = vrot.slane %v916_v0, 4  ;;  %v909_v6 = vadd.f32 %v907_v4, %v1970_v7 }
0x106e   :  { %919 = vrot.lane.b32.xlu0 %v918_v3, %s1804_s30  ;;  %v1421_v48 = vmul.f32 -1.442695, %v909_v6 }
0x1070   :  { %1749 = vpow2.f32 %v1421_v48 }
0x107a   :  { %v1750_v9 = vpop.eup %1749 }
0x107b   :  { %v913_v11 = vadd.f32 1.0, %v1750_v9 }
0x107d   :  { %1751 = vrcp.f32 %v913_v11 }
0x1087   :  { %v1752_v12 = vpop.eup %1751 }
0x1088   :  { %v929_v18 = vsub.f32 1.0, %v1752_v12  ;;  %v937_v21 = vmul.f32 %v1752_v12, %v935_v17 }
0x10e0   :  { %v920_v13 = vpop.permute.xlu0 %919 }
0x10e1   :  { %v922_v51 = vmul.f32 %v1752_v12, %v920_v13 }
0x10e3   :  { %924 = vrot.lane.b32.xlu1 %v922_v51, %s1804_s30 }
0x1155   :  { %v925_v14 = vpop.permute.xlu1 %924 }
0x1156   :  { %v927_v15 = vadd.f32 %v925_v14, %v1970_v7  ;;  %v1152_v7 = vld [vmem:[%s2165_s6 + $0x8] sm:$0xff]  ;;  %s1777_s6 = scalar_lea.vmem %s1394_s26, 64 }
0x1157   :  { %v1688_v25 = vpack.c.bf16 %v1152_v7, %v1151_v24  ;;  %v1280_v24 = vld [vmem:[%s2169_s10 + $0x18] sm:$0xff]  ;;  %p1778_p0 = scmp.ne.s32.totalorder %s1394_s26, %s1777_s6  ;;  %p1783_p2 = scmp.lt.s32.totalorder %s1777_s6, %s1777_s6 }
0x1158   :  { %1753 = vtanh.f32 %v927_v15 }
0x1159   :  { %p1784_p3 = por %p1783_p2, %p1782_p1 }
0x115b   :  { %p1785_p4 = pnand %p1784_p3, %p1778_p0 }
0x1162   :  { %v1754_v16 = vpop.eup %1753 }
0x1163   :  { %931 = vrot.lane.b32.xlu0 %v1754_v16, %s1805_s3 }
0x11d5   :  { %v932_v19 = vpop.permute.xlu0 %931 }
0x11d6   :  { %v934_v20 = vmul.f32 %v932_v19, %v929_v18 }
0x11d8   :  { %v938_v22 = vadd.f32 %v937_v21, %v934_v20  ;;  %v1269_v20 = vld [vmem:[%s2168_s9] sm:$0xf] }
0x11d9   :  { %v1277_v21 = vld [vmem:[%s2169_s10] sm:$0xff] }
0x11da   :  { %v940_v23 = vrot.slane %v938_v22, 4  ;;  %v1278_v22 = vld [vmem:[%s2169_s10 + $0x8] sm:$0xff] }
0x11dc   :  { %941 = vrot.lane.b32.xlu1 %v940_v23, %s1805_s3 }
0x124e   :  { %v942_v28 = vpop.permute.xlu1 %941 }
0x124f   :  { %1587 = vmatmul.mubr.msk.f32.vlgmr.msra.gmra.mrb[12].mxu0 %vm298_vm2, %v942_v28  ;;  %v1700_v28 = vpack.c.bf16 %v1282_v27, %v1281_v26 }
0x1250   :  { %1689 = vmatpush3.bf16.msra.mxu0 %v1688_v25  ;;  %1608 = vmatprep.mubr.msk.f32.mxu0 %vm1802_vm1, %v1803_v46 }
0x1251   :  { %1690 = vmatprep.subr.bf16.mxu0 %v1801_v41 }
0x1254   :  { %1692 = vmatpush3.bf16.msra.mxu0 %v1691_v29  ;;  %v1283_v29 = vld [vmem:[%s2169_s10 + $0x30] sm:$0xff] }
0x1257   :  { %1609 = vmatmul.mubr.f32.vlgmr.msra.gmra.mrb[14].mxu0 %v1803_v46 }
0x1322   :  { %v1011_v30 = vpop.f32.mrb[12].mxu0 }
0x1323   :  { %v1022_v31 = vadd.f32 %v1011_v30, %v1974_v10  ;;  %v1588_v32 = vpop.f32.mrb[13].mxu0  ;;  %v1015_v35 = vadd.f32 %v1011_v30, %v1968_v5  ;;  %v1284_v30 = vld [vmem:[%s2169_s10 + $0x38] sm:$0xff] }
0x1325   :  { %1024 = vrot.lane.b32.xlu0 %v1022_v31, %s1804_s30  ;;  %v1423_v36 = vmul.f32 -1.442695, %v1015_v35  ;;  %v1703_v31 = vpack.c.bf16 %v1284_v30, %v1283_v29 }
0x1327   :  { %1755 = vpow2.f32 %v1423_v36 }
0x132a   :  { %v1222_v33 = vpop.f32.mrb[14].mxu0 }
0x132b   :  { %v1610_v34 = vpop.f32.mrb[15].mxu0  ;;  %v1226_v58 = vadd.f32 %v1222_v33, %v290_v57 }
0x132c   :  { %v1285_v34 = vld [vmem:[%s2169_s10 + $0x40] sm:$0x3] }
0x132d   :  { %v1426_v59 = vmul.f32 -1.442695, %v1226_v58 }
0x1331   :  { %v1756_v37 = vpop.eup %1755 }
0x1332   :  { %v1019_v38 = vadd.f32 1.0, %v1756_v37 }
0x1334   :  { %1757 = vrcp.f32 %v1019_v38 }
0x133e   :  { %v1758_v39 = vpop.eup %1757 }
0x133f   :  { %v1034_v47 = vsub.f32 1.0, %v1758_v39  ;;  %v1041_v50 = vmul.f32 %v1758_v39, %v940_v23  ;;  %v1694_v23 = vpack.c.bf16 %v1278_v22, %v1277_v21 }
0x1397   :  { %v1025_v40 = vpop.permute.xlu0 %1024 }
0x1398   :  { %v1027_v2 = vmul.f32 %v1758_v39, %v1025_v40 }
0x139a   :  { %1029 = vrot.lane.b32.xlu1 %v1027_v2, %s1804_s30 }
0x140c   :  { %v1030_v42 = vpop.permute.xlu1 %1029 }
0x140d   :  { %v1032_v43 = vadd.f32 %v1030_v42, %v1968_v5 }
0x140f   :  { %1759 = vtanh.f32 %v1032_v43 }
0x1410   :  { %1761 = vpow2.f32 %v1426_v59 }
0x1419   :  { %v1760_v44 = vpop.eup %1759 }
0x141a   :  { %1036 = vrot.lane.b32.xlu0 %v1760_v44, %s1805_s3  ;;  %v1762_v60 = vpop.eup %1761 }
0x141b   :  { %v1230_v61 = vadd.f32 1.0, %v1762_v60 }
0x141d   :  { %1763 = vrcp.f32 %v1230_v61 }
0x141e   :  { %1238 = vrot.lane.b32.xlu0 %v1427_v45, %s1804_s30  ;;  %v1428_v45 = vld [vmem:[%s2170_s11] ss:$0 sm:$0xff] }
0x1427   :  { %v2086_v63 = vpop.eup %1763 }
0x1428   :  { %v1253_v39 = vsub.f32 1.0, %v2086_v63  ;;  %v1259_v2 = vmul.f32 0.0, %v2086_v63 }
0x148c   :  { %v1037_v49 = vpop.permute.xlu0 %1036 }
0x148d   :  { %v1039_v52 = vmul.f32 %v1037_v49, %v1034_v47 }
0x148f   :  { %v2076_v53 = vadd.f32 %v1041_v50, %v1039_v52 }
0x1490   :  { %v1239_v54 = vpop.permute.xlu0 %1238 }
0x1491   :  { %v1241_v55 = vadd.f32 %v1239_v54, %v1222_v33  ;;  %1044 = vrot.lane.b32.xlu1 %v2076_v53, %s1805_s3  ;;  %v1147_v32 = vrot.slane %v2076_v53, 4 }
0x1493   :  { %1243 = vrot.lane.b32.xlu0 %v1241_v55, %s1804_s30 }
0x1503   :  { %v1045_v62 = vpop.permute.xlu1 %1044 }
0x1504   :  { %1598 = vmatmul.mubr.msk.f32.vlgmr.msra.gmra.mrb[6].mxu1 %vm298_vm2, %v1045_v62 }
0x1505   :  { %v1244_v0 = vpop.permute.xlu0 %1243  ;;  %1629 = vmatprep.mubr.msk.f32.mxu1 %vm1802_vm1, %v1803_v46  ;;  %1695 = vmatpush3.bf16.msra.mxu1 %v1694_v23 }
0x1506   :  { %v1246_v1 = vmul.f32 %v2086_v63, %v1244_v0  ;;  %1696 = vmatprep.subr.bf16.mxu1 %v1801_v41 }
0x1508   :  { %1248 = vrot.lane.b32.xlu0 %v1246_v1, %s1804_s30 }
0x157a   :  { %v1249_v8 = vpop.permute.xlu0 %1248 }
0x157b   :  { %v1251_v3 = vadd.f32 %v1249_v8, %v290_v57 }
0x157d   :  { %1765 = vtanh.f32 %v1251_v3 }
0x1587   :  { %v1766_v4 = vpop.eup %1765 }
0x1588   :  { %1255 = vrot.lane.b32.xlu0 %v1766_v4, %s1805_s3 }
0x158c   :  { %1271 = vrot.lane.b32.xlu0 %v1269_v20, %s1804_s30 }
0x15d7   :  { %v1114_v6 = vpop.f32.mrb[6].mxu1 }
0x15d8   :  { %v1128_v48 = vadd.f32 %v1114_v6, %v1974_v10  ;;  %v1599_v9 = vpop.f32.mrb[7].mxu1  ;;  %v1119_v12 = vrot.slane %v1114_v6, 4 }
0x15da   :  { %v1130_v11 = vrot.slane %v1128_v48, 4  ;;  %v1121_v13 = vadd.f32 %v1119_v12, %v1968_v5 }
0x15dc   :  { %1131 = vrot.lane.b32.xlu1 %v1130_v11, %s1804_s30  ;;  %v1425_v51 = vmul.f32 -1.442695, %v1121_v13 }
0x15de   :  { %1767 = vpow2.f32 %v1425_v51 }
0x15e8   :  { %v1768_v14 = vpop.eup %1767 }
0x15e9   :  { %v1125_v15 = vadd.f32 1.0, %v1768_v14 }
0x15eb   :  { %1769 = vrcp.f32 %v1125_v15 }
0x15f5   :  { %v1770_v16 = vpop.eup %1769 }
0x15f6   :  { %v1141_v33 = vsub.f32 1.0, %v1770_v16  ;;  %v1149_v37 = vmul.f32 %v1770_v16, %v1147_v32 }
0x164e   :  { %v1132_v17 = vpop.permute.xlu1 %1131 }
0x164f   :  { %v1134_v18 = vmul.f32 %v1770_v16, %v1132_v17 }
0x1651   :  { %1136 = vrot.lane.b32.xlu1 %v1134_v18, %s1804_s30 }
0x16c3   :  { %v1137_v19 = vpop.permute.xlu1 %1136 }
0x16c4   :  { %v1139_v10 = vadd.f32 %v1137_v19, %v1968_v5  ;;  %v1279_v5 = vld [vmem:[%s2169_s10 + $0x10] sm:$0xff] }
0x16c5   :  { %v1697_v7 = vpack.c.bf16 %v1280_v24, %v1279_v5 }
0x16c6   :  { %1771 = vtanh.f32 %v1139_v10 }
0x16c7   :  { %1698 = vmatpush3.bf16.msra.mxu1 %v1697_v7 }
0x16c8   :  { %1699 = vmatprep.subr.bf16.mxu1 %v1801_v41 }
0x16cb   :  { %1701 = vmatpush3.bf16.msra.mxu1 %v1700_v28 }
0x16cc   :  { %1702 = vmatprep.subr.bf16.mxu1 %v1801_v41  ;;  %v1256_v41 = vpop.permute.xlu0 %1255 }
0x16cd   :  { %v1258_v40 = vmul.f32 %v1256_v41, %v1253_v39 }
0x16cf   :  { %1704 = vmatpush3.bf16.msra.mxu1 %v1703_v31 }
0x16d0   :  { %v1772_v25 = vpop.eup %1771  ;;  %1627 = vmatprep.subr.mxu1 %v1803_v46  ;;  %v1260_v46 = vadd.f32 %v1259_v2, %v1258_v40  ;;  %v1272_v43 = vpop.permute.xlu0 %1271 }
0x16d1   :  { %1143 = vrot.lane.b32.xlu1 %v1772_v25, %s1805_s3 }
0x16d3   :  { %1628 = vmatpush3.msk.msra.mxu1 %vm1297_vm3, %v1285_v34 }
0x1743   :  { %v1144_v35 = vpop.permute.xlu1 %1143 }
0x1744   :  { %v1146_v36 = vmul.f32 %v1144_v35, %v1141_v33 }
0x1746   :  { %v1150_v38 = vadd.f32 %v1149_v37, %v1146_v36 }
0x1748   :  { %1262 = vrot.lane.b32.xlu1 %v1150_v38, %s1805_s3 }
0x17ba   :  { %v1263_v42 = vpop.permute.xlu1 %1262 }
0x17bb   :  { %1266 = vst.msk [vmem:[#allocation2 - $0x4] sm:$0xf0] %vm1265_vm4, %v1263_v42 }
0x17bc   :  { %1268 = vst.msk [vmem:[#allocation2] sm:$0xf] %vm1267_vm5, %v1260_v46 }
0x17bd   :  { %1275 = vst.msk [vmem:[#allocation2] sm:$0xf] %vm1274_vm6, %v1272_v43 }
0x17c4   :  { %v1276_v44 = vld [vmem:[#allocation2] sm:$0xf] }
0x17c5   :  { %1630 = vmatmul.mubr.msk.f32.vlgmr.msra.gmra.mrb[8].mxu1 %vm1293_vm7, %v1276_v44 }
0x1898   :  { %v1367_v47 = vpop.f32.mrb[8].mxu1 }
0x1899   :  { %v1368_v49 = vadd.f32 %v1428_v45, %v1367_v47  ;;  %v1631_v50 = vpop.f32.mrb[9].mxu1 }
0x189b   :  { %v1372_v52 = vsel %vm1371_vm8, %v1368_v49, -inf }
0x189c   :  { %1373 = vmax.xlane.f32.xlu1 %v1372_v52 }
0x1929   :  { %v1374_v53 = vpop.xlane.xlu1 %1373 }
0x192a   :  { %v1375_v54 = vsub.f32 %v1368_v49, %v1374_v53 }
0x192c   :  { %v1376_v55 = vmul.f32 1.442695, %v1375_v54 }
0x192e   :  { %1773 = vpow2.f32 %v1376_v55 }
0x1938   :  { %v1774_v56 = vpop.eup %1773 }
0x1939   :  { %v1378_v57 = vsel %vm1371_vm8, %v1774_v56, 0.0 }
0x193a   :  { %1379 = vadd.xlane.f32.xlu0 %v1378_v57 }
0x193b   :  { %1788 = shalt.err (!%p1785_p4)
}
0x193c   :  { %s1789_s28 = scalar_lea.hbm %s2172_s13, 64 }
0x193d   :  { %p1790_p5 = scmp.ne.s32.totalorder %s2172_s13, %s1789_s28  ;;  %p1793_p6 = scmp.lt.u32.totalorder %s1789_s28, %s2172_s13 }
0x193f   :  { %p1795_p7 = pnand %p1793_p6, %p1790_p5 }
0x1941   :  { %1798 = shalt.err (!%p1795_p7)
}
0x1942   :  { %1396 = dma.vmem_to_hbm [thread:$0]  %s1394_s26, 64, %s2172_s13, [#allocation3]  }
0x19c7   :  { %v1380_v58 = vpop.xlane.xlu0 %1379 }
0x19c8   :  { %1775 = vlog2.f32 %v1380_v58 }
0x19d2   :  { %v1776_v59 = vpop.eup %1775 }
0x19d3   :  { %v1382_v60 = vmul.f32 0.6931472, %v1776_v59 }
0x19d5   :  { %v1383_v61 = vsub.f32 %v1375_v54, %v1382_v60 }
0x19d7   :  { %1384 = vst.msk [vmem:[%s2171_s12] sm:$0xf] %vm1371_vm8, %v1383_v61 }
0x19d8   :  { %1799 = dma.done.wait [#allocation3], 64  }
0x19d9   :  { %1800 = vsyncadd [#allocation3], 4294967232 }
0x19da   :  { %1402 = vsyncpa [#allocation3], 1 }

</bundles_post_ra>
